<compile_context>
chip_gen: v5e
topology: v5e:2x2
jax: 0.10.0
libtpu: 0.0.40
codegen_flags: <defaults>
</compile_context>

<pallas_src>
import jax
import jax.numpy as jnp
from jax.experimental import pallas as pl
from jax.experimental.pallas import tpu as pltpu

_HIDDEN = (64, 32, 16, 1)


def _leaky_relu(x, slope=0.01):
    return jnp.where(x > 0, x, slope * x)


def attacker_mlp_kernel(x_ref,
                        w1_ref, b1_ref,
                        w2_ref, b2_ref,
                        w3_ref, b3_ref,
                        w4t_ref, b4_ref,
                        o_ref):
    """Fused forward on one batch tile.

    x_ref  : [TB, input_dim]  batch-major tile straight from HBM (no wrapper copy)
    wN_ref : [out, in]        PyTorch layout, VMEM-resident across grid steps
    bN_ref : [out, 1]
    w4t_ref: [16, 1]          final layer weights, pre-transposed (used off-MXU)
    o_ref  : [1, TB]          lane-dense output row
    """
    # In-kernel transpose (XLU) -> feature-major activations, batch on the lane axis.
    xt = x_ref[...].T                                                  # [D, TB]

    # Linear(input_dim, 64) + LeakyReLU   (Dropout(0.4) -> identity in eval)
    h = jnp.dot(w1_ref[...], xt, preferred_element_type=jnp.float32) + b1_ref[...]
    h = _leaky_relu(h)                                                 # [64, TB]

    # Linear(64, 32) + LeakyReLU          (Dropout(0.3) -> identity in eval)
    h = jnp.dot(w2_ref[...], h, preferred_element_type=jnp.float32) + b2_ref[...]
    h = _leaky_relu(h)                                                 # [32, TB]

    # Linear(32, 16) + LeakyReLU
    h = jnp.dot(w3_ref[...], h, preferred_element_type=jnp.float32) + b3_ref[...]
    h = _leaky_relu(h)                                                 # [16, TB]

    # Linear(16, 1): off the MXU — lane-broadcast multiply (VPU) + sublane reduce
    # (XLU); a 1x16 matmul would fill a tiny fraction of the MXU M-dim.
    logits = jnp.sum(w4t_ref[...] * h, axis=0, keepdims=True) + b4_ref[...]  # [1, TB]

    # Numerically stable sigmoid (bounded even on garbage lanes of a ragged tile).
    z = jnp.exp(-jnp.abs(logits))
    num = jnp.where(logits >= 0, 1.0, z)
    o_ref[...] = (num / (1.0 + z)).astype(o_ref.dtype)


def _round_up(n, m):
    return ((n + m - 1) // m) * m


def _vmem_needed(tb, input_dim, x_itemsize, param_bytes):
    x_tile = 2 * tb * input_dim * x_itemsize          # double-buffered input tile
    out_tile = 2 * tb * 4                             # double-buffered output tile
    inter = tb * (input_dim + sum(_HIDDEN) + 8) * 4   # transposed x + f32 activations
    return x_tile + out_tile + inter + 2 * param_bytes


def attacker_model_forward(x, params, *, block_b=8192):
    """x: [B, input_dim] (batch-major, PyTorch semantics). Returns [B, 1] float32.

    x / weights may be float32 or bfloat16; accumulation is always f32."""
    B, input_dim = x.shape
    (w1, b1), (w2, b2), (w3, b3), (w4, b4) = params
    w4t = jnp.transpose(w4)                           # [16, 1] for off-MXU final layer

    param_arrays = (w1, b1, w2, b2, w3, b3, w4t, b4)
    param_bytes = sum(int(a.size) * a.dtype.itemsize for a in param_arrays)

    # ---- Batch-tile selection ------------------------------------------------
    # Lane-dense tiles, 512-aligned when possible (>=512 lane elements needed to
    # amortize the ~0.35us per-step overhead); >=2 grid steps so v7x's two
    # TensorCores both get work; clamped to a conservative VMEM budget (v7x has
    # only 64 MiB of VMEM vs 128 MiB on v5e/v6e).
    align = 512 if B >= 512 else 128
    tb = min(block_b, _round_up(B, align))
    if B >= 2 * align:
        tb = min(tb, _round_up(pl.cdiv(B, 2), align))
    tile_budget = 20 << 20
    while tb > align and _vmem_needed(tb, input_dim, x.dtype.itemsize,
                                      param_bytes) > tile_budget:
        tb = _round_up(tb // 2, align)
    nb = pl.cdiv(B, tb)           # ragged last block: OOB output lanes are discarded

    resident = lambda shape: pl.BlockSpec(shape, lambda i: (0, 0))  # fetched once

    grid_spec = pltpu.PrefetchScalarGridSpec(
        num_scalar_prefetch=0,
        grid=(nb,),
        in_specs=[
            pl.BlockSpec((tb, input_dim), lambda i: (i, 0)),   # x tile, pipelined
            resident(w1.shape), resident(b1.shape),
            resident(w2.shape), resident(b2.shape),
            resident(w3.shape), resident(b3.shape),
            resident(w4t.shape), resident(b4.shape),
        ],
        out_specs=pl.BlockSpec((1, tb), lambda i: (0, i)),      # lane-dense output
    )

    flops = 2 * B * (input_dim * 64 + 64 * 32 + 32 * 16 + 16 * 1)
    bytes_accessed = int(x.size) * x.dtype.itemsize + B * 4 + param_bytes
    vmem_limit = int(min(100 << 20,
                         max(32 << 20,
                             _vmem_needed(tb, input_dim, x.dtype.itemsize,
                                          param_bytes) + (4 << 20))))

    out = pl.pallas_call(
        attacker_mlp_kernel,
        out_shape=jax.ShapeDtypeStruct((1, B), jnp.float32),
        grid_spec=grid_spec,
        compiler_params=pltpu.CompilerParams(
            dimension_semantics=("parallel",),   # batch tiles across TCs on v7x
            vmem_limit_bytes=vmem_limit,
        ),
        cost_estimate=pl.CostEstimate(
            flops=flops, transcendentals=B, bytes_accessed=bytes_accessed),
    )(x, w1, b1, w2, b2, w3, b3, w4t, b4)

    return out.reshape(B, 1)


def init_params(key, input_dim):
    """nn.Linear-style init (uniform +/- 1/sqrt(fan_in)).
    Weights in PyTorch layout [out_features, in_features]; biases [out_features, 1]."""
    dims = [(input_dim, 64), (64, 32), (32, 16), (16, 1)]
    params = []
    for fan_in, fan_out in dims:
        key, kw, kb = jax.random.split(key, 3)
        bound = 1.0 / jnp.sqrt(jnp.float32(fan_in))
        w = jax.random.uniform(kw, (fan_out, fan_in), jnp.float32, -bound, bound)
        b = jax.random.uniform(kb, (fan_out, 1), jnp.float32, -bound, bound)
        params.append((w, b))
    return params


def reference_forward(x, params):
    """Pure-JAX reference (batch-major) for sanity checking the kernel."""
    h = x
    for i, (w, b) in enumerate(params):
        h = h @ w.T + b.T
        if i < 3:
            h = jnp.where(h > 0, h, 0.01 * h)
    return jax.nn.sigmoid(h)


if __name__ == "__main__":
    key = jax.random.PRNGKey(0)
    key, kx, kp = jax.random.split(key, 3)

    # Small but non-trivial: B not a multiple of the tile, so the ragged last
    # block and a multi-step batch grid (tb=256 -> grid=(2,)) are both exercised.
    B, input_dim = 300, 32
    x = jax.random.normal(kx, (B, input_dim), jnp.float32)
    params = init_params(kp, input_dim)

    out = attacker_model_forward(x, params)
    out = jax.block_until_ready(out)

    ref = reference_forward(x, params)
    assert out.shape == (B, 1)
    assert jnp.allclose(out, ref, atol=1e-4, rtol=1e-4), "mismatch vs reference"

    print("KERNEL_OK")
</pallas_src>

<mosaic_0001>
module attributes {stable_mosaic.version = 11 : i64} {
  func.func @attacker_mlp_kernel(%arg0: i32, %arg1: memref<256x32xf32, #tpu.memory_space<vmem>>, %arg2: memref<64x32xf32, #tpu.memory_space<vmem>>, %arg3: memref<64x1xf32, #tpu.memory_space<vmem>>, %arg4: memref<32x64xf32, #tpu.memory_space<vmem>>, %arg5: memref<32x1xf32, #tpu.memory_space<vmem>>, %arg6: memref<16x32xf32, #tpu.memory_space<vmem>>, %arg7: memref<16x1xf32, #tpu.memory_space<vmem>>, %arg8: memref<16x1xf32, #tpu.memory_space<vmem>>, %arg9: memref<1x1xf32, #tpu.memory_space<vmem>>, %arg10: memref<1x256xf32, #tpu.memory_space<vmem>>) attributes {dimension_semantics = [#tpu.dimension_semantics<parallel>], iteration_bounds = array<i64: 2>, scalar_prefetch = 0 : i64, scratch_operands = 0 : i64, tpu.core_type = #tpu.core_type<tc>, window_params = [{transform_indices = @transform_0, window_bounds = array<i64: 256, 32>}, {pipeline_mode = #tpu.pipeline_mode<synchronous>, transform_indices = @transform_1, window_bounds = array<i64: 64, 32>}, {pipeline_mode = #tpu.pipeline_mode<synchronous>, transform_indices = @transform_2, window_bounds = array<i64: 64, 1>}, {pipeline_mode = #tpu.pipeline_mode<synchronous>, transform_indices = @transform_3, window_bounds = array<i64: 32, 64>}, {pipeline_mode = #tpu.pipeline_mode<synchronous>, transform_indices = @transform_4, window_bounds = array<i64: 32, 1>}, {pipeline_mode = #tpu.pipeline_mode<synchronous>, transform_indices = @transform_5, window_bounds = array<i64: 16, 32>}, {pipeline_mode = #tpu.pipeline_mode<synchronous>, transform_indices = @transform_6, window_bounds = array<i64: 16, 1>}, {pipeline_mode = #tpu.pipeline_mode<synchronous>, transform_indices = @transform_7, window_bounds = array<i64: 16, 1>}, {pipeline_mode = #tpu.pipeline_mode<synchronous>, transform_indices = @transform_8, window_bounds = array<i64: 1, 1>}, {transform_indices = @transform_9, window_bounds = array<i64: 1, 256>}]} {
    %c0 = arith.constant 0 : index
    %c0_0 = arith.constant 0 : index
    %0 = vector.load %arg1[%c0, %c0_0] : memref<256x32xf32, #tpu.memory_space<vmem>>, vector<256x32xf32>
    %1 = tpu.transpose %0, [1, 0] : vector<256x32xf32> -> vector<32x256xf32>
    %c0_1 = arith.constant 0 : index
    %c0_2 = arith.constant 0 : index
    %2 = vector.load %arg2[%c0_1, %c0_2] : memref<64x32xf32, #tpu.memory_space<vmem>>, vector<64x32xf32>
    %cst = arith.constant dense<0.000000e+00> : vector<64x256xf32>
    %3 = tpu.matmul %2, %1, %cst {dimension_numbers = #tpu.dot_dimension_numbers<[1], [0], [0], [1], [0, 0, 1, 1], [], []>} : vector<64x32xf32>, vector<32x256xf32>, vector<64x256xf32> -> vector<64x256xf32>
    %c0_3 = arith.constant 0 : index
    %c0_4 = arith.constant 0 : index
    %4 = vector.load %arg3[%c0_3, %c0_4] : memref<64x1xf32, #tpu.memory_space<vmem>>, vector<64x1xf32>
    %5 = vector.broadcast %4 : vector<64x1xf32> to vector<64x256xf32>
    %6 = arith.addf %3, %5 : vector<64x256xf32>
    %cst_5 = arith.constant 0.000000e+00 : f32
    %7 = vector.broadcast %cst_5 : f32 to vector<64x256xf32>
    %8 = arith.cmpf ogt, %6, %7 : vector<64x256xf32>
    %cst_6 = arith.constant 0.00999999977 : f32
    %9 = vector.broadcast %cst_6 : f32 to vector<64x256xf32>
    %10 = arith.mulf %9, %6 : vector<64x256xf32>
    %11 = arith.select %8, %6, %10 : vector<64x256xi1>, vector<64x256xf32>
    %c0_7 = arith.constant 0 : index
    %c0_8 = arith.constant 0 : index
    %12 = vector.load %arg4[%c0_7, %c0_8] : memref<32x64xf32, #tpu.memory_space<vmem>>, vector<32x64xf32>
    %cst_9 = arith.constant dense<0.000000e+00> : vector<32x256xf32>
    %13 = tpu.matmul %12, %11, %cst_9 {dimension_numbers = #tpu.dot_dimension_numbers<[1], [0], [0], [1], [0, 0, 1, 1], [], []>} : vector<32x64xf32>, vector<64x256xf32>, vector<32x256xf32> -> vector<32x256xf32>
    %c0_10 = arith.constant 0 : index
    %c0_11 = arith.constant 0 : index
    %14 = vector.load %arg5[%c0_10, %c0_11] : memref<32x1xf32, #tpu.memory_space<vmem>>, vector<32x1xf32>
    %15 = vector.broadcast %14 : vector<32x1xf32> to vector<32x256xf32>
    %16 = arith.addf %13, %15 : vector<32x256xf32>
    %cst_12 = arith.constant 0.000000e+00 : f32
    %17 = vector.broadcast %cst_12 : f32 to vector<32x256xf32>
    %18 = arith.cmpf ogt, %16, %17 : vector<32x256xf32>
    %cst_13 = arith.constant 0.00999999977 : f32
    %19 = vector.broadcast %cst_13 : f32 to vector<32x256xf32>
    %20 = arith.mulf %19, %16 : vector<32x256xf32>
    %21 = arith.select %18, %16, %20 : vector<32x256xi1>, vector<32x256xf32>
    %c0_14 = arith.constant 0 : index
    %c0_15 = arith.constant 0 : index
    %22 = vector.load %arg6[%c0_14, %c0_15] : memref<16x32xf32, #tpu.memory_space<vmem>>, vector<16x32xf32>
    %cst_16 = arith.constant dense<0.000000e+00> : vector<16x256xf32>
    %23 = tpu.matmul %22, %21, %cst_16 {dimension_numbers = #tpu.dot_dimension_numbers<[1], [0], [0], [1], [0, 0, 1, 1], [], []>} : vector<16x32xf32>, vector<32x256xf32>, vector<16x256xf32> -> vector<16x256xf32>
    %c0_17 = arith.constant 0 : index
    %c0_18 = arith.constant 0 : index
    %24 = vector.load %arg7[%c0_17, %c0_18] : memref<16x1xf32, #tpu.memory_space<vmem>>, vector<16x1xf32>
    %25 = vector.broadcast %24 : vector<16x1xf32> to vector<16x256xf32>
    %26 = arith.addf %23, %25 : vector<16x256xf32>
    %cst_19 = arith.constant 0.000000e+00 : f32
    %27 = vector.broadcast %cst_19 : f32 to vector<16x256xf32>
    %28 = arith.cmpf ogt, %26, %27 : vector<16x256xf32>
    %cst_20 = arith.constant 0.00999999977 : f32
    %29 = vector.broadcast %cst_20 : f32 to vector<16x256xf32>
    %30 = arith.mulf %29, %26 : vector<16x256xf32>
    %31 = arith.select %28, %26, %30 : vector<16x256xi1>, vector<16x256xf32>
    %c0_21 = arith.constant 0 : index
    %c0_22 = arith.constant 0 : index
    %32 = vector.load %arg8[%c0_21, %c0_22] : memref<16x1xf32, #tpu.memory_space<vmem>>, vector<16x1xf32>
    %33 = vector.broadcast %32 : vector<16x1xf32> to vector<16x256xf32>
    %34 = arith.mulf %33, %31 : vector<16x256xf32>
    %cst_23 = arith.constant dense<0.000000e+00> : vector<256xf32>
    %35 = vector.multi_reduction <add>, %34, %cst_23 [0] : vector<16x256xf32> to vector<256xf32>
    %36 = vector.shape_cast %35 : vector<256xf32> to vector<1x256xf32>
    %c0_24 = arith.constant 0 : index
    %c0_25 = arith.constant 0 : index
    %37 = vector.load %arg9[%c0_24, %c0_25] : memref<1x1xf32, #tpu.memory_space<vmem>>, vector<1x1xf32>
    %38 = vector.broadcast %37 : vector<1x1xf32> to vector<1x256xf32>
    %39 = arith.addf %36, %38 : vector<1x256xf32>
    %40 = math.absf %39 : vector<1x256xf32>
    %cst_26 = arith.constant 0.000000e+00 : f32
    %41 = vector.broadcast %cst_26 : f32 to vector<1x256xf32>
    %42 = arith.subf %41, %40 : vector<1x256xf32>
    %43 = math.exp %42 : vector<1x256xf32>
    %cst_27 = arith.constant 0.000000e+00 : f32
    %44 = vector.broadcast %cst_27 : f32 to vector<1x256xf32>
    %45 = arith.cmpf oge, %39, %44 : vector<1x256xf32>
    %cst_28 = arith.constant 1.000000e+00 : f32
    %46 = vector.broadcast %cst_28 : f32 to vector<1x256xf32>
    %47 = arith.select %45, %46, %43 : vector<1x256xi1>, vector<1x256xf32>
    %cst_29 = arith.constant 1.000000e+00 : f32
    %48 = vector.broadcast %cst_29 : f32 to vector<1x256xf32>
    %49 = arith.addf %48, %43 : vector<1x256xf32>
    %50 = arith.divf %47, %49 : vector<1x256xf32>
    %c0_30 = arith.constant 0 : index
    %c0_31 = arith.constant 0 : index
    %51 = vector.load %arg10[%c0_30, %c0_31] : memref<1x256xf32, #tpu.memory_space<vmem>>, vector<1x256xf32>
    tpu.vector_store %arg10[%c0_30, %c0_31], %50 {strides = array<i32>} : memref<1x256xf32, #tpu.memory_space<vmem>>, vector<1x256xf32>,
    return
  }
  func.func @transform_0(%arg0: i32) -> (i32, i32) {
    %c0_i32 = arith.constant 0 : i32
    %c0_i32_0 = arith.constant 0 : i32
    return %arg0, %c0_i32 : i32, i32
  }
  func.func @transform_1(%arg0: i32) -> (i32, i32) {
    %c0_i32 = arith.constant 0 : i32
    %c0_i32_0 = arith.constant 0 : i32
    %c0_i32_1 = arith.constant 0 : i32
    return %c0_i32, %c0_i32_0 : i32, i32
  }
  func.func @transform_2(%arg0: i32) -> (i32, i32) {
    %c0_i32 = arith.constant 0 : i32
    %c0_i32_0 = arith.constant 0 : i32
    %c0_i32_1 = arith.constant 0 : i32
    return %c0_i32, %c0_i32_0 : i32, i32
  }
  func.func @transform_3(%arg0: i32) -> (i32, i32) {
    %c0_i32 = arith.constant 0 : i32
    %c0_i32_0 = arith.constant 0 : i32
    %c0_i32_1 = arith.constant 0 : i32
    return %c0_i32, %c0_i32_0 : i32, i32
  }
  func.func @transform_4(%arg0: i32) -> (i32, i32) {
    %c0_i32 = arith.constant 0 : i32
    %c0_i32_0 = arith.constant 0 : i32
    %c0_i32_1 = arith.constant 0 : i32
    return %c0_i32, %c0_i32_0 : i32, i32
  }
  func.func @transform_5(%arg0: i32) -> (i32, i32) {
    %c0_i32 = arith.constant 0 : i32
    %c0_i32_0 = arith.constant 0 : i32
    %c0_i32_1 = arith.constant 0 : i32
    return %c0_i32, %c0_i32_0 : i32, i32
  }
  func.func @transform_6(%arg0: i32) -> (i32, i32) {
    %c0_i32 = arith.constant 0 : i32
    %c0_i32_0 = arith.constant 0 : i32
    %c0_i32_1 = arith.constant 0 : i32
    return %c0_i32, %c0_i32_0 : i32, i32
  }
  func.func @transform_7(%arg0: i32) -> (i32, i32) {
    %c0_i32 = arith.constant 0 : i32
    %c0_i32_0 = arith.constant 0 : i32
    %c0_i32_1 = arith.constant 0 : i32
    return %c0_i32, %c0_i32_0 : i32, i32
  }
  func.func @transform_8(%arg0: i32) -> (i32, i32) {
    %c0_i32 = arith.constant 0 : i32
    %c0_i32_0 = arith.constant 0 : i32
    %c0_i32_1 = arith.constant 0 : i32
    return %c0_i32, %c0_i32_0 : i32, i32
  }
  func.func @transform_9(%arg0: i32) -> (i32, i32) {
    %c0_i32 = arith.constant 0 : i32
    %c0_i32_0 = arith.constant 0 : i32
    return %c0_i32, %arg0 : i32, i32
  }
}

</mosaic_0001>

<bundles_post_ra>
// kernel: tpu_custom_call.1
= control target key start
LH: loop header
LB: loop body
LE: loop exit
PB: predicated region body
PF: predicated region fallthrough
CT: control target
= control target key end

     0   :  { %s1619_s0 = inlined_call_operand.vmem [shape: f32[300,32], index: 0, kind: input, shape index: {}]   ;;  %s1620_s1 = inlined_call_operand.vmem [shape: f32[64,32], index: 1, kind: input, shape index: {}]   ;;  %s1621_s2 = inlined_call_operand.vmem [shape: f32[64,1], index: 2, kind: input, shape index: {}]   ;;  %s1622_s3 = inlined_call_operand.vmem [shape: f32[32,64], index: 3, kind: input, shape index: {}]   ;;  %s1623_s4 = inlined_call_operand.vmem [shape: f32[32,1], index: 4, kind: input, shape index: {}]   ;;  %s1624_s5 = inlined_call_operand.vmem [shape: f32[16,32], index: 5, kind: input, shape index: {}]   ;;  %s1625_s6 = inlined_call_operand.vmem [shape: f32[16,1], index: 6, kind: input, shape index: {}]   ;;  %s1626_s7 = inlined_call_operand.vmem [shape: f32[16,1], index: 7, kind: input, shape index: {}]   ;;  %s1627_s8 = inlined_call_operand.<no memory space> [shape: f32[1,1], index: 8, kind: input, shape index: {}]   ;;  %s1628_s9 = inlined_call_operand.hbm [shape: f32[1,300], index: 9, kind: output, shape index: {}]  }
   0x1   :  { %v14_v0 = vstv %s1627_s8 }
   0x2   :  { %15 = vst [vmem:[#allocation2] sm:$0x1] %v14_v0 }
   0x3   :  { %16 = vsyncpa [#allocation4], 0 }
   0x4   :  { %18 = vsyncpa [#allocation4 + $0x1], 0  ;;  %s1325_s11 = smov 0   ;;  %s1327_s12 = smov 0  }
   0x5   :  { %s1329_s13 = smov 0   ;;  %s1331_s14 = smov 0  }
   0x6 LB: > { %s1346_s8 = sadd.s32 4294967295, %s1268_s14   ;;  %s1073_s15 = sadd.s32 4294967294, %s1268_s14   ;;  %s1268_s14 = sphi %s1331_s14, %s1639_s14   ;;  %s1264_s13 = sphi %s1329_s13, %s1638_s13   ;;  %s1260_s12 = sphi %s1327_s12, %s1637_s12   ;;  %s1256_s11 = sphi %s1325_s11, %s1636_s11  }
   0x7   : > { %s1350_s16 = sadd.s32 1, %s1268_s14   ;;  %s225_s17 = sadd.s32 1, %s1264_s13 }
   0x8   : > { %s222_s18 = ssub.s32 %s1268_s14, %s1350_s16  ;;  %p235_p0 = scmp.ne.s32.totalorder %s1264_s13, %s1260_s12 }
   0x9   : > { %p223_p1 = scmp.eq.s32.totalorder %s222_s18, 0  ;;  %p236_p2 = scmp.eq.s32.totalorder %s1346_s8, 1 }
   0xa   : > { %p241_p3 = scmp.ne.s32.totalorder %s1260_s12, %s1256_s11  ;;  %p242_p4 = scmp.eq.s32.totalorder %s1073_s15, 1 }
   0xb   : > { %s1361_s19 = scalar_select %p223_p1, %s1264_s13, %s225_s17  }
   0xc   : > { %p1363_p5 = por %p236_p2, %p235_p0  ;;  %p1367_p6 = por %p242_p4, %p241_p3 }
   0xd   : > { %p1076_p7 = scmp.ge.s32.totalorder %s1268_s14, 1  ;;  %p301_p8 = scmp.lt.s32.totalorder %s1268_s14, 3 }
   0xf   : > { %p302_p9 = pnand %p1076_p7, %p301_p8 }
  0x10   : > { %s1078_s22 = sshll.u32 (!%p302_p9), %s1346_s8, 5 }
  0x11   : > { %305 = sbr.rel (%p302_p9) target bundleno = 701 (0x2bd), region = 56  ;;  %p346_p10 = scmp.lt.s32.totalorder (!%p302_p9), %s1078_s22, 37 }
  0x16   : > { %s1641_s22 = smov (!%p346_p10, %s1078_s22), 37  ;;  %vm447_vm0 = vcmask 261120   ;;  %v404_v15 = vld [vmem:[%s1621_s2 + $0x28] sm:$0xff]  ;;  %v1270_v18 = vmov 0   ;;  %v406_v21 = vld [vmem:[%s1621_s2 + $0x38] sm:$0xff]  ;;  %v403_v22 = vld [vmem:[%s1621_s2 + $0x20] sm:$0xff] }
  0x17   : > { %s1079_s23 = sshll.u32 %s1641_s22, 3  ;;  %1185 = vset.pattern.permute.xlu1 %v1270_v18  ;;  %1184 = vset.pattern.permute.xlu0 %v1270_v18  ;;  %v405_v27 = vld [vmem:[%s1621_s2 + $0x30] sm:$0xff]  ;;  %v399_v28 = vld [vmem:[%s1621_s2] sm:$0xff]  ;;  %v400_v33 = vld [vmem:[%s1621_s2 + $0x8] sm:$0xff]  ;;  %s338_s22 = sand.u32 1, %s1260_s12  }
  0x18   : > { %s1377_s26 = scalar_lea.vmem %s1619_s0, %s1079_s23  ;;  %434 = vperm.xlu1 %1185, %v404_v15   ;;  %1186 = vset.pattern.permute.xlu2 %v1270_v18  ;;  %v391_v40 = vld [vmem:[%s1620_s1] sm:$0xff]  ;;  %v392_v41 = vld [vmem:[%s1620_s1 + $0x8] sm:$0xff]  ;;  %v402_v42 = vld [vmem:[%s1621_s2 + $0x18] sm:$0xff]  ;;  %s1077_s23 = sshll.u32 %s338_s22, 1 }
  0x19   : > { %v374_v1 = vld [vmem:[%s1377_s26 + $0x78] sm:$0xff]  ;;  %v373_v3 = vld [vmem:[%s1377_s26 + $0x70] sm:$0xff]  ;;  %v372_v5 = vld [vmem:[%s1377_s26 + $0x68] sm:$0xff]  ;;  %444 = vperm.xlu0 %1184, %v406_v21   ;;  %424 = vperm.xlu2 %1186, %v402_v42   ;;  %s340_s24 = scalar_lea.vmem [#allocation3], %s1077_s23  ;;  %s1564_s25 = scalar_lea.sflag [#allocation4], %s338_s22 }
  0x1a   : > { %v390_v2 = vld [vmem:[%s1377_s26 + $0xf8] sm:$0xff]  ;;  %1080 = vmatpush.xpose.msk.msra.mxu0 %vm447_vm0, %v374_v1  ;;  %v389_v4 = vld [vmem:[%s1377_s26 + $0xf0] sm:$0xff]  ;;  %v388_v6 = vld [vmem:[%s1377_s26 + $0xe8] sm:$0xff] }
  0x1b   : > { %1104 = vmatpush.xpose.msk.msra.mxu1 %vm447_vm0, %v390_v2  ;;  %v371_v7 = vld [vmem:[%s1377_s26 + $0x60] sm:$0xff]  ;;  %v370_v9 = vld [vmem:[%s1377_s26 + $0x58] sm:$0xff]  ;;  %v369_v11 = vld [vmem:[%s1377_s26 + $0x50] sm:$0xff] }
  0x1c   : > { %v387_v8 = vld [vmem:[%s1377_s26 + $0xe0] sm:$0xff]  ;;  %v386_v10 = vld [vmem:[%s1377_s26 + $0xd8] sm:$0xff]  ;;  %v385_v12 = vld [vmem:[%s1377_s26 + $0xd0] sm:$0xff] }
  0x1d   : > { %v368_v13 = vld [vmem:[%s1377_s26 + $0x48] sm:$0xff]  ;;  %v367_v16 = vld [vmem:[%s1377_s26 + $0x40] sm:$0xff]  ;;  %v366_v19 = vld [vmem:[%s1377_s26 + $0x38] sm:$0xff] }
  0x1e   : > { %1081 = vmatpush.xpose.msk.msra.mxu0 %vm447_vm0, %v373_v3  ;;  %v384_v14 = vld [vmem:[%s1377_s26 + $0xc8] sm:$0xff]  ;;  %v383_v17 = vld [vmem:[%s1377_s26 + $0xc0] sm:$0xff]  ;;  %v382_v20 = vld [vmem:[%s1377_s26 + $0xb8] sm:$0xff] }
  0x1f   : > { %1105 = vmatpush.xpose.msk.msra.mxu1 %vm447_vm0, %v389_v4  ;;  %v365_v23 = vld [vmem:[%s1377_s26 + $0x30] sm:$0xff]  ;;  %v364_v25 = vld [vmem:[%s1377_s26 + $0x28] sm:$0xff]  ;;  %v363_v29 = vld [vmem:[%s1377_s26 + $0x20] sm:$0xff] }
  0x20   : > { %v381_v24 = vld [vmem:[%s1377_s26 + $0xb0] sm:$0xff]  ;;  %429 = vperm.xlu1 %1185, %v403_v22   ;;  %v380_v26 = vld [vmem:[%s1377_s26 + $0xa8] sm:$0xff]  ;;  %v379_v30 = vld [vmem:[%s1377_s26 + $0xa0] sm:$0xff] }
  0x21   : > { %439 = vperm.xlu0 %1184, %v405_v27   ;;  %v362_v31 = vld [vmem:[%s1377_s26 + $0x18] sm:$0xff]  ;;  %v361_v34 = vld [vmem:[%s1377_s26 + $0x10] sm:$0xff]  ;;  %v360_v36 = vld [vmem:[%s1377_s26 + $0x8] sm:$0xff] }
  0x22   : > { %1082 = vmatpush.xpose.msk.msra.mxu0 %vm447_vm0, %v372_v5  ;;  %v378_v32 = vld [vmem:[%s1377_s26 + $0x98] sm:$0xff]  ;;  %v377_v35 = vld [vmem:[%s1377_s26 + $0x90] sm:$0xff]  ;;  %v376_v37 = vld [vmem:[%s1377_s26 + $0x88] sm:$0xff] }
  0x23   : > { %1106 = vmatpush.xpose.msk.msra.mxu1 %vm447_vm0, %v388_v6  ;;  %v359_v38 = vld [vmem:[%s1377_s26] sm:$0xff]  ;;  %v704_v43 = vld [vmem:[%s1623_s4 + $0x10] sm:$0xff]  ;;  %v703_v45 = vld [vmem:[%s1623_s4 + $0x8] sm:$0xff] }
  0x24   : > { %v375_v39 = vld [vmem:[%s1377_s26 + $0x80] sm:$0xff]  ;;  %v393_v44 = vld [vmem:[%s1620_s1 + $0x10] sm:$0xff]  ;;  %v394_v48 = vld [vmem:[%s1620_s1 + $0x18] sm:$0xff] }
  0x25   : > { %v401_v46 = vld [vmem:[%s1621_s2 + $0x10] sm:$0xff]  ;;  %v823_v47 = vld [vmem:[%s1625_s6] sm:$0xff]  ;;  %v824_v49 = vld [vmem:[%s1625_s6 + $0x8] sm:$0xff] }
  0x26   : > { %1083 = vmatpush.xpose.msk.msra.mxu0 %vm447_vm0, %v371_v7  ;;  %419 = vperm.xlu2 %1186, %v401_v46   ;;  %v900_v50 = vld [vmem:[%s1626_s7 + $0x8] sm:$0xff]  ;;  %v705_v51 = vld [vmem:[%s1623_s4 + $0x18] sm:$0xff]  ;;  %v395_v52 = vld [vmem:[%s1620_s1 + $0x20] sm:$0xff] }
  0x27   : > { %1107 = vmatpush.xpose.msk.msra.mxu1 %vm447_vm0, %v387_v8  ;;  %v929_v53 = vld [vmem:[#allocation2] sm:$0x1]  ;;  %v396_v55 = vld [vmem:[%s1620_s1 + $0x28] sm:$0xff]  ;;  %v397_v57 = vld [vmem:[%s1620_s1 + $0x30] sm:$0xff] }
  0x28   : > { %409 = vperm.xlu1 %1185, %v399_v28   ;;  %v702_v54 = vld [vmem:[%s1623_s4] sm:$0xff]  ;;  %v398_v58 = vld [vmem:[%s1620_s1 + $0x38] sm:$0xff] }
  0x29   : > { %414 = vperm.xlu0 %1184, %v400_v33   ;;  %v899_v56 = vld [vmem:[%s1626_s7] sm:$0xff] }
  0x2a   : > { %1084 = vmatpush.xpose.msk.msra.mxu0 %vm447_vm0, %v370_v9 }
  0x2b   : > { %1108 = vmatpush.xpose.msk.msra.mxu1 %vm447_vm0, %v386_v10 }
  0x2e   : > { %1085 = vmatpush.xpose.msk.msra.mxu0 %vm447_vm0, %v369_v11  ;;  %723 = vperm.xlu2 %1186, %v705_v51  }
  0x2f   : > { %1109 = vmatpush.xpose.msk.msra.mxu1 %vm447_vm0, %v385_v12 }
  0x30   : > { %713 = vperm.xlu1 %1185, %v703_v45  }
  0x31   : > { %718 = vperm.xlu0 %1184, %v704_v43  }
  0x32   : > { %1086 = vmatpush.xpose.msk.msra.mxu0 %vm447_vm0, %v368_v13 }
  0x33   : > { %1110 = vmatpush.xpose.msk.msra.mxu1 %vm447_vm0, %v384_v14 }
  0x36   : > { %1087 = vmatpush.xpose.msk.msra.mxu0 %vm447_vm0, %v367_v16  ;;  %708 = vperm.xlu2 %1186, %v702_v54  }
  0x37   : > { %1111 = vmatpush.xpose.msk.msra.mxu1 %vm447_vm0, %v383_v17 }
  0x38   : > { %832 = vperm.xlu1 %1185, %v824_v49  }
  0x39   : > { %827 = vperm.xlu0 %1184, %v823_v47  }
  0x3a   : > { %1088 = vmatpush.xpose.msk.msra.mxu0 %vm447_vm0, %v366_v19 }
  0x3b   : > { %1112 = vmatpush.xpose.msk.msra.mxu1 %vm447_vm0, %v382_v20 }
  0x3e   : > { %1089 = vmatpush.xpose.msk.msra.mxu0 %vm447_vm0, %v365_v23  ;;  %903 = vperm.xlu2 %1186, %v899_v56  }
  0x3f   : > { %1113 = vmatpush.xpose.msk.msra.mxu1 %vm447_vm0, %v381_v24 }
  0x40   : > { %932 = vperm.xlu1 %1185, %v929_v53  }
  0x41   : > { %908 = vperm.xlu0 %1184, %v900_v50  }
  0x42   : > { %1090 = vmatpush.xpose.msk.msra.mxu0 %vm447_vm0, %v364_v25 }
  0x43   : > { %1114 = vmatpush.xpose.msk.msra.mxu1 %vm447_vm0, %v380_v26 }
  0x46   : > { %1091 = vmatpush.xpose.msk.msra.mxu0 %vm447_vm0, %v363_v29 }
  0x47   : > { %1115 = vmatpush.xpose.msk.msra.mxu1 %vm447_vm0, %v379_v30 }
  0x4a   : > { %1092 = vmatpush.xpose.msk.msra.mxu0 %vm447_vm0, %v362_v31 }
  0x4b   : > { %1116 = vmatpush.xpose.msk.msra.mxu1 %vm447_vm0, %v378_v32 }
  0x4e   : > { %1093 = vmatpush.xpose.msk.msra.mxu0 %vm447_vm0, %v361_v34 }
  0x4f   : > { %1117 = vmatpush.xpose.msk.msra.mxu1 %vm447_vm0, %v377_v35 }
  0x52   : > { %1094 = vmatpush.xpose.msk.msra.mxu0 %vm447_vm0, %v360_v36 }
  0x53   : > { %1118 = vmatpush.xpose.msk.msra.mxu1 %vm447_vm0, %v376_v37 }
  0x56   : > { %1095 = vmatpush.xpose.msk.msra.mxu0 %vm447_vm0, %v359_v38 }
  0x57   : > { %1119 = vmatpush.xpose.msk.msra.mxu1 %vm447_vm0, %v375_v39 }
  0x59   : > { %1096 = vmatmul.msk.f32.vlgmr.msra.gmra.mxu0 %vm447_vm0, %v391_v40 }
  0x5a   : > { %1120 = vmatmul.msk.f32.vlgmr.msra.gmra.mxu1 %vm447_vm0, %v391_v40 }
  0x61   : > { %1097 = vmatmul.msk.f32.gmra.mxu0 %vm447_vm0, %v392_v41 }
  0x62   : > { %1121 = vmatmul.msk.f32.gmra.mxu1 %vm447_vm0, %v392_v41 }
  0x69   : > { %1098 = vmatmul.msk.f32.gmra.mxu0 %vm447_vm0, %v393_v44 }
  0x6a   : > { %1122 = vmatmul.msk.f32.gmra.mxu1 %vm447_vm0, %v393_v44 }
  0x71   : > { %1099 = vmatmul.msk.f32.gmra.mxu0 %vm447_vm0, %v394_v48 }
  0x72   : > { %1123 = vmatmul.msk.f32.gmra.mxu1 %vm447_vm0, %v394_v48 }
  0x73   : > { %v425_v11 = vpop.permute.xlu2 %424 }
  0x79   : > { %1100 = vmatmul.msk.f32.gmra.mxu0 %vm447_vm0, %v395_v52 }
  0x7a   : > { %1124 = vmatmul.msk.f32.gmra.mxu1 %vm447_vm0, %v395_v52 }
  0x80   : > { %v420_v26 = vpop.permute.xlu2 %419 }
  0x81   : > { %1101 = vmatmul.msk.f32.gmra.mxu0 %vm447_vm0, %v396_v55 }
  0x82   : > { %1125 = vmatmul.msk.f32.gmra.mxu1 %vm447_vm0, %v396_v55 }
  0x89   : > { %1102 = vmatmul.msk.f32.gmra.mxu0 %vm447_vm0, %v397_v57 }
  0x8a   : > { %1126 = vmatmul.msk.f32.gmra.mxu1 %vm447_vm0, %v397_v57  ;;  %v435_v8 = vpop.permute.xlu1 %434 }
  0x8b   : > { %v445_v7 = vpop.permute.xlu0 %444 }
  0x91   : > { %1103 = vmatmul.msk.f32.gmra.mxu0 %vm447_vm0, %v398_v58 }
  0x92   : > { %1127 = vmatmul.msk.f32.gmra.mxu1 %vm447_vm0, %v398_v58  ;;  %v430_v13 = vpop.permute.xlu1 %429 }
  0x93   : > { %v440_v12 = vpop.permute.xlu0 %439 }
  0x9a   : > { %v410_v38 = vpop.permute.xlu1 %409 }
  0x9b   : > { %v415_v31 = vpop.permute.xlu0 %414 }
  0xd6   : > { %v1531_v59 = vpop.f32.mrf.mxu0 }
  0xd7   : > { %v1533_v60 = vpop.f32.mrf.mxu1  ;;  %v586_v49 = vadd.f32 %v1531_v59, %v410_v38 }
  0xd8   : > { %v627_v50 = vadd.f32 %v1533_v60, %v410_v38 }
  0xd9   : > { %vm650_vm15 = vcmp.gt.f32.partialorder %v586_v49, 0.0 }
  0xde   : > { %v588_v61 = vpop.f32.mrf.mxu0 }
  0xdf   : > { %v629_v62 = vpop.f32.mrf.mxu1  ;;  %v589_v43 = vadd.f32 %v588_v61, %v415_v31  ;;  %v666_v61 = vmul.f32 0.01, %v586_v49 }
  0xe0   : > { %v630_v44 = vadd.f32 %v629_v62, %v415_v31  ;;  %v667_v62 = vmul.f32 0.01, %v627_v50 }
  0xe1   : > { %v668_v57 = vmul.f32 0.01, %v589_v43  ;;  %vm652_vm13 = vcmp.gt.f32.partialorder %v589_v43, 0.0 }
  0xe2   : > { %v669_v58 = vmul.f32 0.01, %v630_v44  ;;  %vm653_vm14 = vcmp.gt.f32.partialorder %v630_v44, 0.0 }
  0xe6   : > { %v591_v63 = vpop.f32.mrf.mxu0 }
  0xe7   : > { %v632_v0 = vpop.f32.mrf.mxu1  ;;  %v592_v36 = vadd.f32 %v591_v63, %v420_v26  ;;  %v684_v63 = vsel %vm652_vm13, %v589_v43, %v668_v57 }
  0xe8   : > { %v633_v37 = vadd.f32 %v632_v0, %v420_v26  ;;  %v685_v0 = vsel %vm653_vm14, %v630_v44, %v669_v58  ;;  %v822_v44 = vld [vmem:[%s1624_s5 + $0x8] sm:$0xff] }
  0xe9   : > { %v670_v53 = vmul.f32 0.01, %v592_v36  ;;  %vm654_vm11 = vcmp.gt.f32.partialorder %v592_v36, 0.0 }
  0xea   : > { %v671_v54 = vmul.f32 0.01, %v633_v37  ;;  %vm655_vm12 = vcmp.gt.f32.partialorder %v633_v37, 0.0 }
  0xeb   : > { %v686_v59 = vsel %vm654_vm11, %v592_v36, %v670_v53 }
  0xec   : > { %v687_v60 = vsel %vm655_vm12, %v633_v37, %v671_v54 }
  0xee   : > { %v594_v1 = vpop.f32.mrf.mxu0 }
  0xef   : > { %v635_v2 = vpop.f32.mrf.mxu1  ;;  %v595_v29 = vadd.f32 %v594_v1, %v425_v11  ;;  %v698_v1 = vld [vmem:[%s1622_s3] sm:$0xff] }
  0xf0   : > { %v636_v30 = vadd.f32 %v635_v2, %v425_v11  ;;  %v682_v2 = vsel %vm650_vm15, %v586_v49, %v666_v61  ;;  %v724_v11 = vpop.permute.xlu2 %723 }
  0xf1   : > { %v672_v47 = vmul.f32 0.01, %v595_v29  ;;  %vm656_vm9 = vcmp.gt.f32.partialorder %v595_v29, 0.0 }
  0xf2   : > { %v673_v48 = vmul.f32 0.01, %v636_v30  ;;  %vm657_vm10 = vcmp.gt.f32.partialorder %v636_v30, 0.0 }
  0xf3   : > { %v688_v55 = vsel %vm656_vm9, %v595_v29, %v672_v47 }
  0xf4   : > { %v689_v56 = vsel %vm657_vm10, %v636_v30, %v673_v48 }
  0xf6   : > { %v597_v3 = vpop.f32.mrf.mxu0 }
  0xf7   : > { %v638_v4 = vpop.f32.mrf.mxu1  ;;  %v598_v22 = vadd.f32 %v597_v3, %v430_v13 }
  0xf8   : > { %v639_v23 = vadd.f32 %v638_v4, %v430_v13  ;;  %v699_v4 = vld [vmem:[%s1622_s3 + $0x8] sm:$0xff] }
  0xf9   : > { %v674_v41 = vmul.f32 0.01, %v598_v22  ;;  %vm658_vm7 = vcmp.gt.f32.partialorder %v598_v22, 0.0 }
  0xfa   : > { %v675_v42 = vmul.f32 0.01, %v639_v23  ;;  %vm659_vm8 = vcmp.gt.f32.partialorder %v639_v23, 0.0 }
  0xfb   : > { %v690_v51 = vsel %vm658_vm7, %v598_v22, %v674_v41  ;;  %v821_v41 = vld [vmem:[%s1624_s5] sm:$0xff] }
  0xfc   : > { %v691_v52 = vsel %vm659_vm8, %v639_v23, %v675_v42 }
  0xfe   : > { %v600_v5 = vpop.f32.mrf.mxu0 }
  0xff   : > { %v641_v6 = vpop.f32.mrf.mxu1  ;;  %v601_v18 = vadd.f32 %v600_v5, %v435_v8  ;;  %v700_v5 = vld [vmem:[%s1622_s3 + $0x10] sm:$0xff] }
 0x100   : > { %v642_v19 = vadd.f32 %v641_v6, %v435_v8  ;;  %v701_v6 = vld [vmem:[%s1622_s3 + $0x18] sm:$0xff] }
 0x101   : > { %v676_v34 = vmul.f32 0.01, %v601_v18  ;;  %vm660_vm5 = vcmp.gt.f32.partialorder %v601_v18, 0.0 }
 0x102   : > { %v677_v35 = vmul.f32 0.01, %v642_v19  ;;  %vm661_vm6 = vcmp.gt.f32.partialorder %v642_v19, 0.0 }
 0x103   : > { %v692_v45 = vsel %vm660_vm5, %v601_v18, %v676_v34 }
 0x104   : > { %v693_v46 = vsel %vm661_vm6, %v642_v19, %v677_v35 }
 0x106   : > { %v603_v9 = vpop.f32.mrf.mxu0 }
 0x107   : > { %v644_v10 = vpop.f32.mrf.mxu1  ;;  %v604_v14 = vadd.f32 %v603_v9, %v440_v12 }
 0x108   : > { %v645_v15 = vadd.f32 %v644_v10, %v440_v12 }
 0x109   : > { %v678_v24 = vmul.f32 0.01, %v604_v14  ;;  %vm662_vm3 = vcmp.gt.f32.partialorder %v604_v14, 0.0 }
 0x10a   : > { %v679_v25 = vmul.f32 0.01, %v645_v15  ;;  %vm663_vm4 = vcmp.gt.f32.partialorder %v645_v15, 0.0 }
 0x10b   : > { %v694_v39 = vsel %vm662_vm3, %v604_v14, %v678_v24  ;;  %v719_v14 = vpop.permute.xlu0 %718 }
 0x10c   : > { %v695_v40 = vsel %vm663_vm4, %v645_v15, %v679_v25 }
 0x10e   : > { %v606_v16 = vpop.f32.mrf.mxu0 }
 0x10f   : > { %v647_v17 = vpop.f32.mrf.mxu1  ;;  %v607_v20 = vadd.f32 %v606_v16, %v445_v7 }
 0x110   : > { %v648_v21 = vadd.f32 %v647_v17, %v445_v7  ;;  %v714_v17 = vpop.permute.xlu1 %713 }
 0x111   : > { %vm664_vm1 = vcmp.gt.f32.partialorder %v607_v20, 0.0  ;;  %v680_v27 = vmul.f32 0.01, %v607_v20 }
 0x112   : > { %vm665_vm2 = vcmp.gt.f32.partialorder %v648_v21, 0.0  ;;  %v681_v28 = vmul.f32 0.01, %v648_v21 }
 0x113   : > { %v696_v32 = vsel %vm664_vm1, %v607_v20, %v680_v27  ;;  %vm651_vm1 = vcmp.gt.f32.partialorder %v627_v50, 0.0  ;;  %v709_v20 = vpop.permute.xlu2 %708  ;;  %v828_v47 = vpop.permute.xlu0 %827 }
 0x114   : > { %v697_v33 = vsel %vm665_vm2, %v648_v21, %v681_v28  ;;  %747 = vmatpush.msra.mxu2 %v696_v32  ;;  %vm726_vm2 = vcmask 523264   ;;  %v683_v3 = vsel %vm651_vm1, %v627_v50, %v667_v62 }
 0x115   : > { %776 = vmatpush.msra.mxu3 %v697_v33 }
 0x116   : > { %748 = vmatpush.msra.mxu2 %v694_v39 }
 0x117   : > { %777 = vmatpush.msra.mxu3 %v695_v40 }
 0x118   : > { %749 = vmatpush.msra.mxu2 %v692_v45 }
 0x119   : > { %778 = vmatpush.msra.mxu3 %v693_v46 }
 0x11a   : > { %750 = vmatpush.msra.mxu2 %v690_v51 }
 0x11b   : > { %779 = vmatpush.msra.mxu3 %v691_v52  ;;  %v833_v52 = vpop.permute.xlu1 %832  ;;  %v909_v61 = vpop.permute.xlu0 %908 }
 0x11c   : > { %751 = vmatpush.msra.mxu2 %v688_v55  ;;  %v904_v62 = vpop.permute.xlu2 %903 }
 0x11d   : > { %780 = vmatpush.msra.mxu3 %v689_v56 }
 0x11e   : > { %752 = vmatpush.msra.mxu2 %v686_v59 }
 0x11f   : > { %781 = vmatpush.msra.mxu3 %v687_v60 }
 0x120   : > { %753 = vmatpush.msra.mxu2 %v684_v63 }
 0x121   : > { %782 = vmatpush.msra.mxu3 %v685_v0 }
 0x122   : > { %754 = vmatpush.msra.mxu2 %v682_v2 }
 0x123   : > { %783 = vmatpush.msra.mxu3 %v683_v3  ;;  %1128 = vmatmul.msk.f32.vlgmr.msra.gmra.mxu2 %vm726_vm2, %v698_v1 }
 0x124   : > { %1132 = vmatmul.msk.f32.vlgmr.msra.gmra.mxu3 %vm726_vm2, %v698_v1 }
 0x12b   : > { %1129 = vmatmul.msk.f32.gmra.mxu2 %vm726_vm2, %v699_v4 }
 0x12c   : > { %1133 = vmatmul.msk.f32.gmra.mxu3 %vm726_vm2, %v699_v4 }
 0x133   : > { %1130 = vmatmul.msk.f32.gmra.mxu2 %vm726_vm2, %v700_v5 }
 0x134   : > { %1134 = vmatmul.msk.f32.gmra.mxu3 %vm726_vm2, %v700_v5 }
 0x13b   : > { %1131 = vmatmul.msk.f32.gmra.mxu2 %vm726_vm2, %v701_v6 }
 0x13c   : > { %1135 = vmatmul.msk.f32.gmra.mxu3 %vm726_vm2, %v701_v6 }
 0x1a6   : > { %v756_v7 = vpop.f32.mrf.mxu2 }
 0x1a7   : > { %v785_v8 = vpop.f32.mrf.mxu3  ;;  %v757_v25 = vadd.f32 %v756_v7, %v709_v20 }
 0x1a8   : > { %v786_v26 = vadd.f32 %v785_v8, %v709_v20 }
 0x1a9   : > { %v805_v37 = vmul.f32 0.01, %v757_v25  ;;  %vm797_vm9 = vcmp.gt.f32.partialorder %v757_v25, 0.0 }
 0x1aa   : > { %v806_v38 = vmul.f32 0.01, %v786_v26  ;;  %vm798_vm10 = vcmp.gt.f32.partialorder %v786_v26, 0.0 }
 0x1ab   : > { %v813_v42 = vsel %vm797_vm9, %v757_v25, %v805_v37  ;;  %vm985_vm9 = vcmask 1040384  }
 0x1ac   : > { %v814_v43 = vsel %vm798_vm10, %v786_v26, %v806_v38 }
 0x1ae   : > { %v759_v9 = vpop.f32.mrf.mxu2 }
 0x1af   : > { %v788_v10 = vpop.f32.mrf.mxu3  ;;  %v760_v21 = vadd.f32 %v759_v9, %v714_v17 }
 0x1b0   : > { %v789_v22 = vadd.f32 %v788_v10, %v714_v17 }
 0x1b1   : > { %v807_v33 = vmul.f32 0.01, %v760_v21  ;;  %vm799_vm7 = vcmp.gt.f32.partialorder %v760_v21, 0.0 }
 0x1b2   : > { %v808_v34 = vmul.f32 0.01, %v789_v22  ;;  %vm800_vm8 = vcmp.gt.f32.partialorder %v789_v22, 0.0 }
 0x1b3   : > { %v815_v39 = vsel %vm799_vm7, %v760_v21, %v807_v33 }
 0x1b4   : > { %v816_v40 = vsel %vm800_vm8, %v789_v22, %v808_v34 }
 0x1b6   : > { %v762_v12 = vpop.f32.mrf.mxu2 }
 0x1b7   : > { %v791_v13 = vpop.f32.mrf.mxu3  ;;  %v763_v15 = vadd.f32 %v762_v12, %v719_v14 }
 0x1b8   : > { %v792_v16 = vadd.f32 %v791_v13, %v719_v14 }
 0x1b9   : > { %v809_v27 = vmul.f32 0.01, %v763_v15  ;;  %vm801_vm5 = vcmp.gt.f32.partialorder %v763_v15, 0.0 }
 0x1ba   : > { %v810_v28 = vmul.f32 0.01, %v792_v16  ;;  %vm802_vm6 = vcmp.gt.f32.partialorder %v792_v16, 0.0 }
 0x1bb   : > { %v817_v35 = vsel %vm801_vm5, %v763_v15, %v809_v27  ;;  %v933_v15 = vpop.permute.xlu1 %932 }
 0x1bc   : > { %v818_v36 = vsel %vm802_vm6, %v792_v16, %v810_v28 }
 0x1be   : > { %v765_v18 = vpop.f32.mrf.mxu2 }
 0x1bf   : > { %v794_v19 = vpop.f32.mrf.mxu3  ;;  %v766_v23 = vadd.f32 %v765_v18, %v724_v11  ;;  %v935_v18 = vperm.slane %v933_v15, 0 }
 0x1c0   : > { %v795_v24 = vadd.f32 %v794_v19, %v724_v11 }
 0x1c1   : > { %vm803_vm3 = vcmp.gt.f32.partialorder %v766_v23, 0.0  ;;  %v811_v29 = vmul.f32 0.01, %v766_v23 }
 0x1c2   : > { %vm804_vm4 = vcmp.gt.f32.partialorder %v795_v24, 0.0  ;;  %v812_v30 = vmul.f32 0.01, %v795_v24 }
 0x1c3   : > { %v819_v31 = vsel %vm803_vm3, %v766_v23, %v811_v29 }
 0x1c4   : > { %v820_v32 = vsel %vm804_vm4, %v795_v24, %v812_v30  ;;  %853 = vmatpush.msrb.mxu2 %v819_v31 }
 0x1c5   : > { %876 = vmatpush.msrb.mxu3 %v820_v32 }
 0x1c6   : > { %854 = vmatpush.msrb.mxu2 %v817_v35 }
 0x1c7   : > { %877 = vmatpush.msrb.mxu3 %v818_v36 }
 0x1c8   : > { %855 = vmatpush.msrb.mxu2 %v815_v39 }
 0x1c9   : > { %878 = vmatpush.msrb.mxu3 %v816_v40 }
 0x1ca   : > { %856 = vmatpush.msrb.mxu2 %v813_v42 }
 0x1cb   : > { %879 = vmatpush.msrb.mxu3 %v814_v43  ;;  %1136 = vmatmul.msk.f32.vlgmr.msrb.gmra.mxu2 %vm447_vm0, %v821_v41 }
 0x1cc   : > { %1138 = vmatmul.msk.f32.vlgmr.msrb.gmra.mxu3 %vm447_vm0, %v821_v41 }
 0x1d3   : > { %1137 = vmatmul.msk.f32.gmra.mxu2 %vm447_vm0, %v822_v44 }
 0x1d4   : > { %1139 = vmatmul.msk.f32.gmra.mxu3 %vm447_vm0, %v822_v44 }
 0x24e   : > { %v858_v45 = vpop.f32.mrf.mxu2 }
 0x24f   : > { %v881_v46 = vpop.f32.mrf.mxu3  ;;  %v859_v48 = vadd.f32 %v858_v45, %v828_v47 }
 0x250   : > { %v882_v49 = vadd.f32 %v881_v46, %v828_v47 }
 0x251   : > { %v891_v50 = vmul.f32 0.01, %v859_v48  ;;  %vm887_vm11 = vcmp.gt.f32.partialorder %v859_v48, 0.0 }
 0x252   : > { %v892_v51 = vmul.f32 0.01, %v882_v49  ;;  %vm888_vm12 = vcmp.gt.f32.partialorder %v882_v49, 0.0 }
 0x253   : > { %v895_v57 = vsel %vm887_vm11, %v859_v48, %v891_v50 }
 0x254   : > { %v896_v58 = vsel %vm888_vm12, %v882_v49, %v892_v51  ;;  %v911_v1 = vmul.f32 %v904_v62, %v895_v57  ;;  %v988_v51 = vlaneseq }
 0x255   : > { %v912_v2 = vmul.f32 %v904_v62, %v896_v58 }
 0x256   : > { %v861_v53 = vpop.f32.mrf.mxu2  ;;  %vm990_vm10 = vcmp.lt.s32.totalorder %v988_v51, 256 }
 0x257   : > { %v884_v54 = vpop.f32.mrf.mxu3  ;;  %v862_v55 = vadd.f32 %v861_v53, %v833_v52 }
 0x258   : > { %v885_v56 = vadd.f32 %v884_v54, %v833_v52 }
 0x259   : > { %vm889_vm13 = vcmp.gt.f32.partialorder %v862_v55, 0.0  ;;  %v893_v59 = vmul.f32 0.01, %v862_v55 }
 0x25a   : > { %vm890_vm0 = vcmp.gt.f32.partialorder %v885_v56, 0.0  ;;  %v894_v60 = vmul.f32 0.01, %v885_v56 }
 0x25b   : > { %v897_v63 = vsel %vm889_vm13, %v862_v55, %v893_v59 }
 0x25c   : > { %v898_v0 = vsel %vm890_vm0, %v885_v56, %v894_v60  ;;  %v913_v3 = vmul.f32 %v909_v61, %v897_v63 }
 0x25d   : > { %v914_v4 = vmul.f32 %v909_v61, %v898_v0 }
 0x25e   : > { %v915_v5 = vadd.f32 %v913_v3, %v911_v1 }
 0x25f   : > { %v922_v6 = vadd.f32 %v914_v4, %v912_v2 }
 0x260   : > { %v916_v7 = vrot.slane %v915_v5, 4 }
 0x261   : > { %v923_v8 = vrot.slane %v922_v6, 4 }
 0x262   : > { %v917_v9 = vadd.f32 %v916_v7, %v915_v5 }
 0x263   : > { %v924_v10 = vadd.f32 %v923_v8, %v922_v6 }
 0x264   : > { %v918_v11 = vrot.slane %v917_v9, 2 }
 0x265   : > { %v925_v12 = vrot.slane %v924_v10, 2 }
 0x266   : > { %v919_v13 = vadd.f32 %v918_v11, %v917_v9 }
 0x267   : > { %v926_v14 = vadd.f32 %v925_v12, %v924_v10 }
 0x268   : > { %v920_v16 = vrot.slane %v919_v13, 1 }
 0x269   : > { %v927_v17 = vrot.slane %v926_v14, 1 }
 0x26a   : > { %v921_v19 = vadd.f32 %v920_v16, %v919_v13 }
 0x26b   : > { %v928_v20 = vadd.f32 %v927_v17, %v926_v14 }
 0x26c   : > { %v936_v21 = vadd.f32 %v935_v18, %v921_v19 }
 0x26d   : > { %v937_v22 = vadd.f32 %v935_v18, %v928_v20 }
 0x26e   : > { %v938_v23 = vand.u32 2147483647, %v936_v21  ;;  %vm946_vm8 = vcmp.ge.f32.partialorder %v936_v21, 0.0 }
 0x26f   : > { %v939_v24 = vand.u32 2147483647, %v937_v22  ;;  %vm947_vm4 = vcmp.ge.f32.partialorder %v937_v22, 0.0 }
 0x270   : > { %v940_v25 = vsub.f32 0.0, %v938_v23 }
 0x271   : > { %v941_v26 = vsub.f32 0.0, %v939_v24 }
 0x272   : > { %v942_v27 = vmul.f32 1.442695, %v940_v25 }
 0x273   : > { %v944_v28 = vmul.f32 1.442695, %v941_v26 }
 0x274   : > { %1187 = vpow2.f32 %v942_v27 }
 0x275   : > { %1189 = vpow2.f32 %v944_v28 }
 0x27a   : > { %v1188_v29 = vpop.eup %1187 }
 0x27b   : > { %v1190_v30 = vpop.eup %1189  ;;  %v950_v31 = vadd.f32 1.0, %v1188_v29  ;;  %v948_v56 = vsel %vm946_vm8, 1.0, %v1188_v29 }
 0x27c   : > { %v951_v32 = vadd.f32 1.0, %v1190_v30  ;;  %v949_v53 = vsel %vm947_vm4, 1.0, %v1190_v30 }
 0x27d   : > { %1191 = vrcp.f32 %v950_v31  ;;  %v963_v40 = vand.u32 2147483648, %v950_v31  ;;  %v961_v42 = vand.u32 2147483647, %v950_v31  ;;  %vm957_vm1 = vweird.f32 %v950_v31 }
 0x27e   : > { %1193 = vrcp.f32 %v951_v32  ;;  %v978_v41 = vand.u32 2147483648, %v951_v32  ;;  %v976_v44 = vand.u32 2147483647, %v951_v32  ;;  %vm972_vm3 = vweird.f32 %v951_v32 }
 0x27f   : > { %v964_v48 = vor.u32 1.1754944e-38, %v963_v40  ;;  %vm962_vm6 = vcmp.eq.f32.partialorder %v961_v42, 8.507059e+37 }
 0x280   : > { %v979_v49 = vor.u32 1.1754944e-38, %v978_v41  ;;  %vm977_vm7 = vcmp.eq.f32.partialorder %v976_v44, 8.507059e+37 }
 0x283   : > { %v1192_v33 = vpop.eup %1191 }
 0x284   : > { %v1194_v34 = vpop.eup %1193  ;;  %v953_v35 = vmul.f32 %v1192_v33, %v950_v31  ;;  %vm958_vm14 = vweird.f32 %v1192_v33 }
 0x285   : > { %v968_v36 = vmul.f32 %v1194_v34, %v951_v32  ;;  %vm973_vm15 = vweird.f32 %v1194_v34  ;;  %vm959_vm2 = vmor %vm957_vm1, %vm958_vm14 }
 0x286   : > { %v954_v37 = vsub.f32 1.0, %v953_v35  ;;  %vm974_vm5 = vmor %vm972_vm3, %vm973_vm15 }
 0x287   : > { %v969_v38 = vsub.f32 1.0, %v968_v36 }
 0x288   : > { %v955_v39 = vmul.f32 %v1192_v33, %v954_v37 }
 0x289   : > { %v970_v43 = vmul.f32 %v1194_v34, %v969_v38 }
 0x28a   : > { %v956_v45 = vadd.f32 %v1192_v33, %v955_v39 }
 0x28b   : > { %v971_v46 = vadd.f32 %v1194_v34, %v970_v43 }
 0x28c   : > { %v960_v47 = vsel %vm959_vm2, %v1192_v33, %v956_v45 }
 0x28d   : > { %v975_v50 = vsel %vm974_vm5, %v1194_v34, %v971_v46  ;;  %v965_v52 = vsel %vm962_vm6, %v964_v48, %v960_v47 }
 0x28e   : > { %v980_v54 = vsel %vm977_vm7, %v979_v49, %v975_v50  ;;  %v966_v57 = vmul.f32 %v965_v52, %v948_v56 }
 0x28f   : > { %v981_v55 = vmul.f32 %v980_v54, %v949_v53 }
 0x290   : > { %1000 = sbr.rel (!%p1363_p5) target bundleno = 701 (0x2bd), region = 60 }
 0x291   : > { %v984_v58 = vrot.slane %v981_v55, 7 }
 0x293   : > { %v986_v59 = vsel %vm985_vm9, %v966_v57, %v984_v58 }
 0x294   : > { %992 = vst.msk [vmem:[%s340_s24] sm:$0x3] %vm990_vm10, %v986_v59 }
 0x295   : > { %s1141_s27 = sshll.u32 %s1346_s8, 1 }
 0x296   : > { %s1002_s28 = ssub.s32 3, %s1141_s27 }
 0x297   : > { %p1003_p11 = scmp.lt.s32.totalorder %s1002_s28, 2 }
 0x299   : > { %s1643_s28 = smov (!%p1003_p11, %s1002_s28), 2 }
 0x29a   : > { %s1005_s29 = ssub.s32 2, %s1643_s28 }
 0x29b   : > { %s1006_s30 = sshll.u32 %s1005_s29, 4 }
 0x29c   : > { %1007 = vsyncadd %s1564_s25, %s1006_s30  ;;  %p1142_p12 = scmp.ne.s32.totalorder %s1643_s28, 0  ;;  %s1009_s20 = scalar_lea.hbm %s1628_s9, %s1141_s27 }
 0x29d   : > { %s1010_s15 = sshll.u32 %s1643_s28, 4  ;;  %s1578_s17 = sshll.u32 %s340_s24, 4  ;;  %s1630_s17 = int_to_ptr.vmem [resolvable:$true] %s1578_s17 }
 0x29e   : > { %1633 = sst [smem:[#allocation6_spill]] %s1578_s17  ;;  %s1013_s8 = sshll.u32 %s1009_s20, 4  ;;  %s1014_s8 = int_to_ptr.hbm [resolvable:$true] %s1013_s8 }
 0x29f   : > { %s1195_s18 = sshra.s32 %s1630_s17, 4  ;;  %s1197_s22 = sshrl.u32 %s1010_s15, 4  ;;  %s1196_s18 = int_to_ptr.vmem [resolvable:$true] %s1195_s18 }
 0x2a0   : > { %s1202_s23 = scalar_lea.vmem %s1196_s18, %s1197_s22  ;;  %s1271_s29 = smov [#allocation3]  }
 0x2a1   : > { %p1203_p13 = scmp.ne.s32.totalorder %s1196_s18, %s1202_s23  ;;  %s1206_s27 = scalar_lea.vmem %s1271_s29, 4 }
 0x2a2   : > { %p1208_p2 = scmp.lt.s32.totalorder %s1206_s27, %s1202_s23 }
 0x2a3   : > { %p1204_p0 = pnand %p1203_p13, %p1142_p12 }
 0x2a5   : > { %p1205_p1 = pneg %p1204_p0 }
 0x2a7   : > { %p1210_p3 = pnand %p1208_p2, %p1205_p1 }
 0x2a9   : > { %1213 = shalt.err (!%p1210_p3)
}
 0x2aa   : > { %s1214_s24 = sshra.s32 %s1014_s8, 4  ;;  %s1225_s20 = scalar_lea.hbm %s1628_s9, 3  ;;  %s1215_s24 = int_to_ptr.hbm [resolvable:$true] %s1214_s24 }
 0x2ab   : > { %s1221_s30 = scalar_lea.hbm %s1215_s24, %s1197_s22  ;;  %p1226_p8 = scmp.lt.s32.totalorder %s1215_s24, %s1628_s9 }
 0x2ac   : > { %p1222_p4 = scmp.ne.s32.totalorder %s1215_s24, %s1221_s30  ;;  %p1227_p9 = scmp.lt.s32.totalorder %s1225_s20, %s1221_s30 }
 0x2ae   : > { %p1223_p5 = pnand %p1222_p4, %p1142_p12  ;;  %p1228_p10 = por %p1227_p9, %p1226_p8 }
 0x2b0   : > { %p1224_p7 = pneg %p1223_p5 }
 0x2b2   : > { %p1229_p11 = pnand %p1228_p10, %p1224_p7 }
 0x2b4   : > { %1232 = shalt.err (!%p1229_p11)
}
 0x2b5   : > { %s1634_s22 = sld [smem:[#allocation6_spill]] }
 0x2bb   : > { %s1635_s23 = int_to_ptr.vmem [resolvable:$true] %s1634_s22 }
 0x2bc   : > { %1016 = dma.vmem_to_hbm [thread:$0]  (%p1142_p12), %s1635_s23, %s1010_s15, %s1014_s8, %s1564_s25  }
 0x2bd PF: > { %p1150_p13 = scmp.ge.s32.totalorder %s1268_s14, 2  ;;  %s1025_s17 = sand.u32 1, %s1256_s11  }
 0x2be   : > { %s1026_s29 = scalar_lea.sflag [#allocation4], %s1025_s17 }
 0x2bf   : > { %p1147_p0 = pnand %p1150_p13, %p1367_p6 }
 0x2c1   : > { %p1148_p1 = pneg %p1147_p0 }
 0x2c3   : > { %1251 = dma.done.wait (%p1148_p1), %s1026_s29, 32  }
 0x2c4   : > { %1253 = vsyncadd (%p1148_p1), %s1026_s29, 4294967264  ;;  %p21_p2 = scmp.ge.s32.totalorder %s1350_s16, 4   ;;  %s1636_s11 = smov %s1260_s12 }
 0x2c5   : > { %s1637_s12 = smov %s1264_s13  ;;  %s1638_s13 = smov %s1361_s19 }
 0x2c6   : > { %s1639_s14 = smov %s1350_s16  ;;  %23 = sbr.rel (!%p21_p2) target bundleno = 6 (0x6), region = 91 }
 0x2cb   :  { %1032 = vsyncpa [#allocation4], 1 }
 0x2cc   :  { %1034 = vsyncpa [#allocation4 + $0x1], 1 }

</bundles_post_ra>
